<compile_context>
chip_gen: v7x
topology: tpu7x:2x2x1
jax: 0.10.0
libtpu: 0.0.40
codegen_flags: <defaults>
</compile_context>

<pallas_src>
import functools

import jax
import jax.numpy as jnp
from jax import lax
from jax.experimental import pallas as pl
from jax.experimental.pallas import tpu as pltpu

BN_EPS = 1e-5
LANE = 128


# ----------------------------- Pallas kernels ------------------------------ #
def conv_stats_kernel(p_ref, w_ref, b_ref, y_ref, sum_ref, sumsq_ref):
    """Pass 1: 3x3 conv as a single K = 9*Cin matmul + bias, plus per-channel
    sum / sum-of-squares accumulated across the M grid axis.

      p_ref:      (tm, 9*Cin)  bf16   im2col'd input tile
      w_ref:      (9*Cin, tc)  bf16   folded conv weights (Cout tile)
      b_ref:      (1, tc)      f32    conv bias
      y_ref:      (tm, tc)     f32    conv + bias output tile
      sum_ref:    (1, tc)      f32    per-channel sum   (resident across M tiles)
      sumsq_ref:  (1, tc)      f32    per-channel sumsq (resident across M tiles)
    """
    acc = jnp.dot(p_ref[...], w_ref[...], preferred_element_type=jnp.float32)
    acc = acc + b_ref[...]
    y_ref[...] = acc

    @pl.when(pl.program_id(1) == 0)           # first M tile of this Cout tile
    def _():
        sum_ref[...] = jnp.zeros_like(sum_ref)
        sumsq_ref[...] = jnp.zeros_like(sumsq_ref)

    sum_ref[...] = sum_ref[...] + jnp.sum(acc, axis=0, keepdims=True)
    sumsq_ref[...] = sumsq_ref[...] + jnp.sum(acc * acc, axis=0, keepdims=True)


def bn_relu_kernel(y_ref, scale_ref, shift_ref, o_ref):
    """Pass 2: folded BatchNorm affine + ReLU. All math in f32."""
    o_ref[...] = jnp.maximum(y_ref[...] * scale_ref[...] + shift_ref[...], 0.0)


# ------------------------------- wrappers ---------------------------------- #
def conv_bn_relu(x_nhwc, w_hwio, b, gamma, beta, *, block_m=512):
    """One ConvBlock3('relu'): Conv2d(3x3, pad=1) + BatchNorm2d (training-mode
    batch statistics) + ReLU.  x_nhwc: (N, H, W, Cin) -> (N, H, W, Cout), f32."""
    N, H, W, Cin = x_nhwc.shape
    Cout = w_hwio.shape[-1]
    M = N * H * W
    K = 9 * Cin

    assert block_m % 8 == 0
    tm = block_m
    m_pad = pl.cdiv(M, tm) * tm
    n_pad_rows = m_pad - M
    c_pad = pl.cdiv(Cout, LANE) * LANE
    n_m = m_pad // tm
    n_c = c_pad // LANE

    # ---- im2col (XLA glue: pad + 9 shifted views concatenated on channels) ----
    # TODO(synk): replace with an in-kernel halo gather to avoid the 9x patch
    #             tensor HBM round trip.
    xp = jnp.pad(x_nhwc, ((0, 0), (1, 1), (1, 1), (0, 0)))
    cols = [xp[:, ky:ky + H, kx:kx + W, :] for ky in range(3) for kx in range(3)]
    patches = jnp.concatenate(cols, axis=-1).reshape(M, K)
    patches = jnp.pad(patches, ((0, n_pad_rows), (0, 0))).astype(jnp.bfloat16)

    w2d = jnp.pad(w_hwio.reshape(K, Cout),
                  ((0, 0), (0, c_pad - Cout))).astype(jnp.bfloat16)
    b2d = jnp.pad(b, (0, c_pad - Cout)).reshape(1, c_pad).astype(jnp.float32)

    # ---- pass 1: conv + bias, per-channel sum / sum-of-squares ----
    y2d, ch_sum, ch_sumsq = pl.pallas_call(
        conv_stats_kernel,
        out_shape=(jax.ShapeDtypeStruct((m_pad, c_pad), jnp.float32),
                   jax.ShapeDtypeStruct((1, c_pad), jnp.float32),
                   jax.ShapeDtypeStruct((1, c_pad), jnp.float32)),
        grid=(n_c, n_m),
        in_specs=[
            pl.BlockSpec((tm, K), lambda j, i: (i, 0)),
            pl.BlockSpec((K, LANE), lambda j, i: (0, j)),
            pl.BlockSpec((1, LANE), lambda j, i: (0, j)),
        ],
        out_specs=[
            pl.BlockSpec((tm, LANE), lambda j, i: (i, j)),
            pl.BlockSpec((1, LANE), lambda j, i: (0, j)),
            pl.BlockSpec((1, LANE), lambda j, i: (0, j)),
        ],
        compiler_params=pltpu.CompilerParams(
            dimension_semantics=("parallel", "arbitrary")),
    )(patches, w2d, b2d)

    # ---- fold the BN affine (tiny per-channel math in XLA) ----
    # Padded M rows contain only the bias (their patches are zero); subtract
    # their contribution so statistics are exactly over the true N*H*W batch.
    bias_vec = b2d[0]
    s = ch_sum[0] - n_pad_rows * bias_vec
    ss = ch_sumsq[0] - n_pad_rows * bias_vec * bias_vec
    mean = s / M
    var = jnp.maximum(ss / M - mean * mean, 0.0)            # biased variance
    inv = lax.rsqrt(var + BN_EPS)
    gamma_p = jnp.pad(gamma, (0, c_pad - Cout)).astype(jnp.float32)
    beta_p = jnp.pad(beta, (0, c_pad - Cout)).astype(jnp.float32)
    scale = (gamma_p * inv).reshape(1, c_pad)
    shift = (beta_p - mean * gamma_p * inv).reshape(1, c_pad)

    # ---- pass 2: apply folded BN + ReLU ----
    out2d = pl.pallas_call(
        bn_relu_kernel,
        out_shape=jax.ShapeDtypeStruct((m_pad, c_pad), jnp.float32),
        grid=(n_c, n_m),
        in_specs=[
            pl.BlockSpec((tm, LANE), lambda j, i: (i, j)),
            pl.BlockSpec((1, LANE), lambda j, i: (0, j)),
            pl.BlockSpec((1, LANE), lambda j, i: (0, j)),
        ],
        out_specs=pl.BlockSpec((tm, LANE), lambda j, i: (i, j)),
        compiler_params=pltpu.CompilerParams(
            dimension_semantics=("parallel", "parallel")),
    )(y2d, scale, shift)

    return out2d[:M, :Cout].reshape(N, H, W, Cout)


def bilinear_resize_align_corners(x_nhwc, out_h, out_w):
    """F.interpolate(..., mode='bilinear', align_corners=True) in NHWC (XLA glue)."""
    N, H, W, C = x_nhwc.shape

    def axis_interp(size_in, size_out):
        if size_out == 1:
            src = jnp.zeros((1,), jnp.float32)
        else:
            src = jnp.arange(size_out, dtype=jnp.float32) * (
                (size_in - 1) / (size_out - 1))
        i0 = jnp.clip(jnp.floor(src).astype(jnp.int32), 0, size_in - 1)
        i1 = jnp.clip(i0 + 1, 0, size_in - 1)
        frac = src - i0.astype(jnp.float32)
        return i0, i1, frac

    y0, y1, fy = axis_interp(H, out_h)
    x0, x1, fx = axis_interp(W, out_w)

    top = jnp.take(x_nhwc, y0, axis=1)
    bot = jnp.take(x_nhwc, y1, axis=1)
    rows = top * (1.0 - fy)[None, :, None, None] + bot * fy[None, :, None, None]

    left = jnp.take(rows, x0, axis=2)
    right = jnp.take(rows, x1, axis=2)
    return left * (1.0 - fx)[None, None, :, None] + right * fx[None, None, :, None]


def init_decoder_params(key, input_channels, output_channels, depth=2):
    """Deterministic synthetic parameters for `depth` ConvBlock3('relu') blocks."""
    params = []
    cin = input_channels
    for _ in range(depth):
        key, k1, k2, k3, k4 = jax.random.split(key, 5)
        fan_in = cin * 9
        w = jax.random.normal(k1, (3, 3, cin, output_channels),
                              jnp.float32) / jnp.sqrt(float(fan_in))  # HWIO
        b = 0.1 * jax.random.normal(k2, (output_channels,), jnp.float32)
        gamma = 1.0 + 0.1 * jax.random.normal(k3, (output_channels,), jnp.float32)
        beta = 0.1 * jax.random.normal(k4, (output_channels,), jnp.float32)
        params.append((w, b, gamma, beta))
        cin = output_channels
    return params


def decoder_forward(x_big_nchw, x_nchw, params, *, block_m=512):
    """Decoder.forward. Inputs / output are NCHW like the PyTorch module."""
    x_big = jnp.transpose(x_big_nchw, (0, 2, 3, 1))    # -> NHWC
    x = jnp.transpose(x_nchw, (0, 2, 3, 1))            # -> NHWC
    N, H, W, _ = x_big.shape

    x_ups = bilinear_resize_align_corners(x, H, W)
    y = jnp.concatenate([x_ups, x_big], axis=-1)        # channel concat

    # TODO(synk): fuse the depth=2 blocks to avoid the intermediate activation
    #             + im2col HBM round trip between them.
    for (w, b, gamma, beta) in params:
        y = conv_bn_relu(y, w, b, gamma, beta, block_m=block_m)

    return jnp.transpose(y, (0, 3, 1, 2))               # -> NCHW


def decoder_reference(x_big_nchw, x_nchw, params):
    """Pure-JAX reference (lax.conv with bf16 matmul inputs like the kernel)."""
    x_big = jnp.transpose(x_big_nchw, (0, 2, 3, 1))
    x = jnp.transpose(x_nchw, (0, 2, 3, 1))
    N, H, W, _ = x_big.shape
    x_ups = bilinear_resize_align_corners(x, H, W)
    y = jnp.concatenate([x_ups, x_big], axis=-1)
    for (w, b, gamma, beta) in params:
        conv = lax.conv_general_dilated(
            y.astype(jnp.bfloat16), w.astype(jnp.bfloat16),
            window_strides=(1, 1), padding="SAME",
            dimension_numbers=("NHWC", "HWIO", "NHWC"),
            preferred_element_type=jnp.float32) + b
        mean = jnp.mean(conv, axis=(0, 1, 2))
        var = jnp.var(conv, axis=(0, 1, 2))              # biased
        xhat = (conv - mean) * lax.rsqrt(var + BN_EPS)
        y = jnp.maximum(gamma * xhat + beta, 0.0)
    return jnp.transpose(y, (0, 3, 1, 2))


# --------------------------------- main ------------------------------------ #
if __name__ == "__main__":
    key = jax.random.PRNGKey(0)
    k_big, k_small, k_par = jax.random.split(key, 3)

    # Small shapes consistent with the module: x_big is the skip (full res),
    # x is the coarse feature map that gets upsampled 2x.
    N, C_big, H, W = 2, 4, 16, 16
    C_small, h, w = 4, 8, 8
    x_big = jax.random.normal(k_big, (N, C_big, H, W), jnp.float32)
    x = jax.random.normal(k_small, (N, C_small, h, w), jnp.float32)

    input_channels = C_big + C_small      # channels after concat
    output_channels = 8
    params = init_decoder_params(k_par, input_channels, output_channels, depth=2)

    # block_m=128 so the toy problem (M = 2*16*16 = 512 rows) exercises the
    # multi-tile grid and the cross-tile BN statistics accumulation.
    fwd = jax.jit(functools.partial(decoder_forward, block_m=128))
    out = jax.block_until_ready(fwd(x_big, x, params))

    assert out.shape == (N, output_channels, H, W)
    assert bool(jnp.all(jnp.isfinite(out)))

    ref = decoder_reference(x_big, x, params)
    assert bool(jnp.allclose(out, ref, atol=2e-2, rtol=2e-2)), \
        float(jnp.max(jnp.abs(out - ref)))
    print("KERNEL_OK")
</pallas_src>

<mosaic_0001>
module attributes {stable_mosaic.version = 11 : i64} {
  func.func @conv_stats_kernel(%arg0: i32, %arg1: i32, %arg2: memref<128x72xbf16, #tpu.memory_space<vmem>>, %arg3: memref<72x128xbf16, #tpu.memory_space<vmem>>, %arg4: memref<1x128xf32, #tpu.memory_space<vmem>>, %arg5: memref<128x128xf32, #tpu.memory_space<vmem>>, %arg6: memref<1x128xf32, #tpu.memory_space<vmem>>, %arg7: memref<1x128xf32, #tpu.memory_space<vmem>>) attributes {dimension_semantics = [#tpu.dimension_semantics<parallel>, #tpu.dimension_semantics<arbitrary>], iteration_bounds = array<i64: 1, 4>, scalar_prefetch = 0 : i64, scratch_operands = 0 : i64, tpu.core_type = #tpu.core_type<tc>, window_params = [{transform_indices = @transform_0, window_bounds = array<i64: 128, 72>}, {transform_indices = @transform_1, window_bounds = array<i64: 72, 128>}, {transform_indices = @transform_2, window_bounds = array<i64: 1, 128>}, {transform_indices = @transform_3, window_bounds = array<i64: 128, 128>}, {transform_indices = @transform_4, window_bounds = array<i64: 1, 128>}, {transform_indices = @transform_5, window_bounds = array<i64: 1, 128>}]} {
    %c0 = arith.constant 0 : index
    %c0_0 = arith.constant 0 : index
    %0 = vector.load %arg2[%c0, %c0_0] : memref<128x72xbf16, #tpu.memory_space<vmem>>, vector<128x72xbf16>
    %c0_1 = arith.constant 0 : index
    %c0_2 = arith.constant 0 : index
    %1 = vector.load %arg3[%c0_1, %c0_2] : memref<72x128xbf16, #tpu.memory_space<vmem>>, vector<72x128xbf16>
    %cst = arith.constant dense<0.000000e+00> : vector<128x128xf32>
    %2 = tpu.matmul %0, %1, %cst {dimension_numbers = #tpu.dot_dimension_numbers<[1], [0], [0], [1], [0, 0, 1, 1], [], []>} : vector<128x72xbf16>, vector<72x128xbf16>, vector<128x128xf32> -> vector<128x128xf32>
    %c0_3 = arith.constant 0 : index
    %c0_4 = arith.constant 0 : index
    %3 = vector.load %arg4[%c0_3, %c0_4] : memref<1x128xf32, #tpu.memory_space<vmem>>, vector<1x128xf32>
    %4 = vector.broadcast %3 : vector<1x128xf32> to vector<128x128xf32>
    %5 = arith.addf %2, %4 : vector<128x128xf32>
    %c0_5 = arith.constant 0 : index
    %c0_6 = arith.constant 0 : index
    %6 = vector.load %arg5[%c0_5, %c0_6] : memref<128x128xf32, #tpu.memory_space<vmem>>, vector<128x128xf32>
    tpu.vector_store %arg5[%c0_5, %c0_6], %5 {strides = array<i32>} : memref<128x128xf32, #tpu.memory_space<vmem>>, vector<128x128xf32>,
    %c0_i32 = arith.constant 0 : i32
    %7 = arith.cmpi eq, %arg1, %c0_i32 : i32
    %8 = arith.extui %7 : i1 to i32
    %c0_i32_7 = arith.constant 0 : i32
    %9 = arith.cmpi ne, %8, %c0_i32_7 : i32
    scf.if %9 {
      %cst_18 = arith.constant 0.000000e+00 : f32
      %21 = vector.broadcast %cst_18 : f32 to vector<1x128xf32>
      %c0_19 = arith.constant 0 : index
      %c0_20 = arith.constant 0 : index
      %22 = vector.load %arg6[%c0_19, %c0_20] : memref<1x128xf32, #tpu.memory_space<vmem>>, vector<1x128xf32>
      tpu.vector_store %arg6[%c0_19, %c0_20], %21 {strides = array<i32>} : memref<1x128xf32, #tpu.memory_space<vmem>>, vector<1x128xf32>,
      %cst_21 = arith.constant 0.000000e+00 : f32
      %23 = vector.broadcast %cst_21 : f32 to vector<1x128xf32>
      %c0_22 = arith.constant 0 : index
      %c0_23 = arith.constant 0 : index
      %24 = vector.load %arg7[%c0_22, %c0_23] : memref<1x128xf32, #tpu.memory_space<vmem>>, vector<1x128xf32>
      tpu.vector_store %arg7[%c0_22, %c0_23], %23 {strides = array<i32>} : memref<1x128xf32, #tpu.memory_space<vmem>>, vector<1x128xf32>,
    } else {
    }
    %c0_8 = arith.constant 0 : index
    %c0_9 = arith.constant 0 : index
    %10 = vector.load %arg6[%c0_8, %c0_9] : memref<1x128xf32, #tpu.memory_space<vmem>>, vector<1x128xf32>
    %cst_10 = arith.constant dense<0.000000e+00> : vector<128xf32>
    %11 = vector.multi_reduction <add>, %5, %cst_10 [0] : vector<128x128xf32> to vector<128xf32>
    %12 = vector.shape_cast %11 : vector<128xf32> to vector<1x128xf32>
    %13 = arith.addf %10, %12 : vector<1x128xf32>
    %c0_11 = arith.constant 0 : index
    %c0_12 = arith.constant 0 : index
    %14 = vector.load %arg6[%c0_11, %c0_12] : memref<1x128xf32, #tpu.memory_space<vmem>>, vector<1x128xf32>
    tpu.vector_store %arg6[%c0_11, %c0_12], %13 {strides = array<i32>} : memref<1x128xf32, #tpu.memory_space<vmem>>, vector<1x128xf32>,
    %c0_13 = arith.constant 0 : index
    %c0_14 = arith.constant 0 : index
    %15 = vector.load %arg7[%c0_13, %c0_14] : memref<1x128xf32, #tpu.memory_space<vmem>>, vector<1x128xf32>
    %16 = arith.mulf %5, %5 : vector<128x128xf32>
    %cst_15 = arith.constant dense<0.000000e+00> : vector<128xf32>
    %17 = vector.multi_reduction <add>, %16, %cst_15 [0] : vector<128x128xf32> to vector<128xf32>
    %18 = vector.shape_cast %17 : vector<128xf32> to vector<1x128xf32>
    %19 = arith.addf %15, %18 : vector<1x128xf32>
    %c0_16 = arith.constant 0 : index
    %c0_17 = arith.constant 0 : index
    %20 = vector.load %arg7[%c0_16, %c0_17] : memref<1x128xf32, #tpu.memory_space<vmem>>, vector<1x128xf32>
    tpu.vector_store %arg7[%c0_16, %c0_17], %19 {strides = array<i32>} : memref<1x128xf32, #tpu.memory_space<vmem>>, vector<1x128xf32>,
    return
  }
  func.func @transform_0(%arg0: i32, %arg1: i32) -> (i32, i32) {
    %c0_i32 = arith.constant 0 : i32
    %c0_i32_0 = arith.constant 0 : i32
    return %arg1, %c0_i32 : i32, i32
  }
  func.func @transform_1(%arg0: i32, %arg1: i32) -> (i32, i32) {
    %c0_i32 = arith.constant 0 : i32
    %c0_i32_0 = arith.constant 0 : i32
    return %c0_i32, %arg0 : i32, i32
  }
  func.func @transform_2(%arg0: i32, %arg1: i32) -> (i32, i32) {
    %c0_i32 = arith.constant 0 : i32
    %c0_i32_0 = arith.constant 0 : i32
    return %c0_i32, %arg0 : i32, i32
  }
  func.func @transform_3(%arg0: i32, %arg1: i32) -> (i32, i32) {
    %c0_i32 = arith.constant 0 : i32
    return %arg1, %arg0 : i32, i32
  }
  func.func @transform_4(%arg0: i32, %arg1: i32) -> (i32, i32) {
    %c0_i32 = arith.constant 0 : i32
    %c0_i32_0 = arith.constant 0 : i32
    return %c0_i32, %arg0 : i32, i32
  }
  func.func @transform_5(%arg0: i32, %arg1: i32) -> (i32, i32) {
    %c0_i32 = arith.constant 0 : i32
    %c0_i32_0 = arith.constant 0 : i32
    return %c0_i32, %arg0 : i32, i32
  }
}

module attributes {stable_mosaic.version = 11 : i64} {
  func.func @bn_relu_kernel(%arg0: i32, %arg1: i32, %arg2: memref<128x128xf32, #tpu.memory_space<vmem>>, %arg3: memref<1x128xf32, #tpu.memory_space<vmem>>, %arg4: memref<1x128xf32, #tpu.memory_space<vmem>>, %arg5: memref<128x128xf32, #tpu.memory_space<vmem>>) attributes {dimension_semantics = [#tpu.dimension_semantics<parallel>, #tpu.dimension_semantics<parallel>], iteration_bounds = array<i64: 1, 4>, scalar_prefetch = 0 : i64, scratch_operands = 0 : i64, tpu.core_type = #tpu.core_type<tc>, window_params = [{transform_indices = @transform_0, window_bounds = array<i64: 128, 128>}, {transform_indices = @transform_1, window_bounds = array<i64: 1, 128>}, {transform_indices = @transform_2, window_bounds = array<i64: 1, 128>}, {transform_indices = @transform_3, window_bounds = array<i64: 128, 128>}]} {
    %c0 = arith.constant 0 : index
    %c0_0 = arith.constant 0 : index
    %0 = vector.load %arg2[%c0, %c0_0] : memref<128x128xf32, #tpu.memory_space<vmem>>, vector<128x128xf32>
    %c0_1 = arith.constant 0 : index
    %c0_2 = arith.constant 0 : index
    %1 = vector.load %arg3[%c0_1, %c0_2] : memref<1x128xf32, #tpu.memory_space<vmem>>, vector<1x128xf32>
    %2 = vector.broadcast %1 : vector<1x128xf32> to vector<128x128xf32>
    %3 = arith.mulf %0, %2 : vector<128x128xf32>
    %c0_3 = arith.constant 0 : index
    %c0_4 = arith.constant 0 : index
    %4 = vector.load %arg4[%c0_3, %c0_4] : memref<1x128xf32, #tpu.memory_space<vmem>>, vector<1x128xf32>
    %5 = vector.broadcast %4 : vector<1x128xf32> to vector<128x128xf32>
    %6 = arith.addf %3, %5 : vector<128x128xf32>
    %cst = arith.constant 0.000000e+00 : f32
    %7 = vector.broadcast %cst : f32 to vector<128x128xf32>
    %8 = arith.maximumf %6, %7 : vector<128x128xf32>
    %c0_5 = arith.constant 0 : index
    %c0_6 = arith.constant 0 : index
    %9 = vector.load %arg5[%c0_5, %c0_6] : memref<128x128xf32, #tpu.memory_space<vmem>>, vector<128x128xf32>
    tpu.vector_store %arg5[%c0_5, %c0_6], %8 {strides = array<i32>} : memref<128x128xf32, #tpu.memory_space<vmem>>, vector<128x128xf32>,
    return
  }
  func.func @transform_0(%arg0: i32, %arg1: i32) -> (i32, i32) {
    %c0_i32 = arith.constant 0 : i32
    return %arg1, %arg0 : i32, i32
  }
  func.func @transform_1(%arg0: i32, %arg1: i32) -> (i32, i32) {
    %c0_i32 = arith.constant 0 : i32
    %c0_i32_0 = arith.constant 0 : i32
    return %c0_i32, %arg0 : i32, i32
  }
  func.func @transform_2(%arg0: i32, %arg1: i32) -> (i32, i32) {
    %c0_i32 = arith.constant 0 : i32
    %c0_i32_0 = arith.constant 0 : i32
    return %c0_i32, %arg0 : i32, i32
  }
  func.func @transform_3(%arg0: i32, %arg1: i32) -> (i32, i32) {
    %c0_i32 = arith.constant 0 : i32
    return %arg1, %arg0 : i32, i32
  }
}

</mosaic_0001>

<bundles_post_ra>
// kernel: decoder_forward.5
= control target key start
LH: loop header
LB: loop body
LE: loop exit
PB: predicated region body
PF: predicated region fallthrough
CT: control target
= control target key end

     0   :  { %s512_s12 = smov 0   ;;  %s514_s13 = smov 0   ;;  %s623_s0 = inlined_call_operand.vmem [shape: f32[512,128], index: 0, kind: input, shape index: {}]   ;;  %s624_s1 = inlined_call_operand.vmem [shape: f32[1,128], index: 1, kind: input, shape index: {}]   ;;  %s625_s2 = inlined_call_operand.vmem [shape: f32[1,128], index: 2, kind: input, shape index: {}]   ;;  %s626_s3 = inlined_call_operand.vmem [shape: f32[512,128], index: 3, kind: output, shape index: {}]  }
   0x1   :  { %s516_s14 = smov 0  }
   0x2 LB: > { %s22_s15 = sadd.s32 1, %s486_s13  ;;  %p435_p0 = scmp.ge.s32.totalorder %s490_s14, 1  ;;  %s490_s14 = sphi %s516_s14, %s13_s14   ;;  %s486_s13 = sphi %s514_s13, %s628_s13   ;;  %s482_s12 = sphi %s512_s12, %s627_s12  }
   0x3   : > { %p23_p1 = scmp.ge.s32.totalorder %s22_s15, 4  ;;  %p173_p2 = scmp.lt.s32.totalorder %s490_s14, 5 }
   0x5   : > { %s630_s15 = smov (%p23_p1, %s22_s15), 0  ;;  %p174_p3 = pnand %p435_p0, %p173_p2 }
   0x6   : > { %s436_s16 = sshll.u32 (!%p174_p3), %s482_s12, 4  ;;  %v533_v0 = vld [vmem:[%s624_s1] ss:$0 sm:$0xff] (!%p174_p3) }
   0x7   : > { %177 = sbr.rel (%p174_p3) target bundleno = 35 (0x23), region = 32  ;;  %p210_p4 = scmp.lt.s32.totalorder (!%p174_p3), %s436_s16, 63  ;;  %v543_v1 = vld [vmem:[%s625_s2] ss:$0 sm:$0xff] (!%p174_p3) }
   0xe   : > { %s632_s16 = smov (!%p210_p4, %s436_s16), 63 }
   0xf   : > { %s437_s17 = sshll.u32 %s632_s16, 3 }
  0x10   : > { %s538_s22 = scalar_lea.vmem %s623_s0, %s437_s17  ;;  %s566_s27 = scalar_lea.vmem %s626_s3, %s437_s17 }
  0x11   : > { %v233_v2 = vld [vmem:[%s538_s22] sm:$0xff]  ;;  %v234_v3 = vld [vmem:[%s538_s22 + $0x8] sm:$0xff]  ;;  %v235_v4 = vld [vmem:[%s538_s22 + $0x10] sm:$0xff] }
  0x12   : > { %v256_v5 = vmul.f32 %v533_v0, %v233_v2  ;;  %v257_v6 = vmul.f32 %v533_v0, %v234_v3  ;;  %v258_v7 = vmul.f32 %v533_v0, %v235_v4  ;;  %v236_v8 = vld [vmem:[%s538_s22 + $0x18] sm:$0xff]  ;;  %v237_v9 = vld [vmem:[%s538_s22 + $0x20] sm:$0xff]  ;;  %v238_v10 = vld [vmem:[%s538_s22 + $0x28] sm:$0xff] }
  0x13   : > { %v259_v11 = vmul.f32 %v533_v0, %v236_v8  ;;  %v260_v12 = vmul.f32 %v533_v0, %v237_v9  ;;  %v261_v13 = vmul.f32 %v533_v0, %v238_v10  ;;  %v239_v14 = vld [vmem:[%s538_s22 + $0x30] sm:$0xff]  ;;  %v240_v15 = vld [vmem:[%s538_s22 + $0x38] sm:$0xff]  ;;  %v241_v24 = vld [vmem:[%s538_s22 + $0x40] sm:$0xff] }
  0x14   : > { %v279_v16 = vadd.f32 %v543_v1, %v256_v5  ;;  %v280_v17 = vadd.f32 %v543_v1, %v257_v6  ;;  %v281_v18 = vadd.f32 %v543_v1, %v258_v7  ;;  %v262_v19 = vmul.f32 %v533_v0, %v239_v14  ;;  %v242_v25 = vld [vmem:[%s538_s22 + $0x48] sm:$0xff]  ;;  %v243_v26 = vld [vmem:[%s538_s22 + $0x50] sm:$0xff]  ;;  %v244_v31 = vld [vmem:[%s538_s22 + $0x58] sm:$0xff] }
  0x15   : > { %v282_v20 = vadd.f32 %v543_v1, %v259_v11  ;;  %v283_v21 = vadd.f32 %v543_v1, %v260_v12  ;;  %v284_v22 = vadd.f32 %v543_v1, %v261_v13  ;;  %v263_v23 = vmul.f32 %v533_v0, %v240_v15  ;;  %v245_v32 = vld [vmem:[%s538_s22 + $0x60] sm:$0xff]  ;;  %v246_v33 = vld [vmem:[%s538_s22 + $0x68] sm:$0xff]  ;;  %v247_v38 = vld [vmem:[%s538_s22 + $0x70] sm:$0xff] }
  0x16   : > { %v295_v27 = vmax.f32 %v279_v16, 0.0  ;;  %v296_v28 = vmax.f32 %v280_v17, 0.0  ;;  %v297_v29 = vmax.f32 %v281_v18, 0.0  ;;  %v285_v30 = vadd.f32 %v543_v1, %v262_v19  ;;  %v248_v43 = vld [vmem:[%s538_s22 + $0x78] sm:$0xff] }
  0x17   : > { %v298_v34 = vmax.f32 %v282_v20, 0.0  ;;  %v299_v35 = vmax.f32 %v283_v21, 0.0  ;;  %v300_v36 = vmax.f32 %v284_v22, 0.0  ;;  %v286_v37 = vadd.f32 %v543_v1, %v263_v23 }
  0x18   : > { %311 = vst [vmem:[%s566_s27] sm:$0xff] %v295_v27  ;;  %312 = vst [vmem:[%s566_s27 + $0x8] sm:$0xff] %v296_v28  ;;  %v301_v39 = vmax.f32 %v285_v30, 0.0  ;;  %v264_v40 = vmul.f32 %v533_v0, %v241_v24  ;;  %v265_v41 = vmul.f32 %v533_v0, %v242_v25  ;;  %v266_v42 = vmul.f32 %v533_v0, %v243_v26 }
  0x19   : > { %313 = vst [vmem:[%s566_s27 + $0x10] sm:$0xff] %v297_v29  ;;  %314 = vst [vmem:[%s566_s27 + $0x18] sm:$0xff] %v298_v34  ;;  %v302_v44 = vmax.f32 %v286_v37, 0.0  ;;  %v267_v45 = vmul.f32 %v533_v0, %v244_v31  ;;  %v268_v46 = vmul.f32 %v533_v0, %v245_v32  ;;  %v269_v47 = vmul.f32 %v533_v0, %v246_v33 }
  0x1a   : > { %315 = vst [vmem:[%s566_s27 + $0x20] sm:$0xff] %v299_v35  ;;  %316 = vst [vmem:[%s566_s27 + $0x28] sm:$0xff] %v300_v36  ;;  %v287_v48 = vadd.f32 %v543_v1, %v264_v40  ;;  %v288_v49 = vadd.f32 %v543_v1, %v265_v41  ;;  %v289_v50 = vadd.f32 %v543_v1, %v266_v42 }
  0x1b   : > { %317 = vst [vmem:[%s566_s27 + $0x30] sm:$0xff] %v301_v39  ;;  %v270_v51 = vmul.f32 %v533_v0, %v247_v38  ;;  %318 = vst [vmem:[%s566_s27 + $0x38] sm:$0xff] %v302_v44  ;;  %v290_v52 = vadd.f32 %v543_v1, %v267_v45  ;;  %v291_v53 = vadd.f32 %v543_v1, %v268_v46 }
  0x1c   : > { %v292_v54 = vadd.f32 %v543_v1, %v269_v47  ;;  %v271_v55 = vmul.f32 %v533_v0, %v248_v43  ;;  %v303_v56 = vmax.f32 %v287_v48, 0.0  ;;  %v304_v57 = vmax.f32 %v288_v49, 0.0 }
  0x1d   : > { %v305_v58 = vmax.f32 %v289_v50, 0.0  ;;  %v293_v59 = vadd.f32 %v543_v1, %v270_v51  ;;  %v306_v60 = vmax.f32 %v290_v52, 0.0  ;;  %v307_v61 = vmax.f32 %v291_v53, 0.0 }
  0x1e   : > { %v308_v62 = vmax.f32 %v292_v54, 0.0  ;;  %v294_v63 = vadd.f32 %v543_v1, %v271_v55  ;;  %319 = vst [vmem:[%s566_s27 + $0x40] sm:$0xff] %v303_v56  ;;  %320 = vst [vmem:[%s566_s27 + $0x48] sm:$0xff] %v304_v57 }
  0x1f   : > { %321 = vst [vmem:[%s566_s27 + $0x50] sm:$0xff] %v305_v58  ;;  %v309_v2 = vmax.f32 %v293_v59, 0.0  ;;  %322 = vst [vmem:[%s566_s27 + $0x58] sm:$0xff] %v306_v60 }
  0x20   : > { %323 = vst [vmem:[%s566_s27 + $0x60] sm:$0xff] %v307_v61  ;;  %324 = vst [vmem:[%s566_s27 + $0x68] sm:$0xff] %v308_v62  ;;  %v310_v0 = vmax.f32 %v294_v63, 0.0 }
  0x21   : > { %325 = vst [vmem:[%s566_s27 + $0x70] sm:$0xff] %v309_v2 }
  0x22   : > { %326 = vst [vmem:[%s566_s27 + $0x78] sm:$0xff] %v310_v0 }
  0x23 PF: > { %s13_s14 = sadd.s32 1, %s490_s14   ;;  %s627_s12 = smov %s486_s13 }
  0x24   : > { %p10_p5 = scmp.ge.s32.totalorder %s13_s14, 6   ;;  %s628_s13 = smov %s630_s15 }
  0x26   :  { %12 = sbr.rel (!%p10_p5) target bundleno = 2 (0x2), region = 68 }

// kernel: decoder_forward.4
= control target key start
LH: loop header
LB: loop body
LE: loop exit
PB: predicated region body
PF: predicated region fallthrough
CT: control target
= control target key end

     0   :  { %s936_s18 = smov 0   ;;  %s938_s19 = smov 0   ;;  %s1063_s0 = inlined_call_operand.vmem [shape: bf16[512,72], index: 0, kind: input, shape index: {}]   ;;  %s1064_s1 = inlined_call_operand.vmem [shape: bf16[72,128], index: 1, kind: input, shape index: {}]   ;;  %s1065_s2 = inlined_call_operand.vmem [shape: f32[1,128], index: 2, kind: input, shape index: {}]   ;;  %s1066_s3 = inlined_call_operand.vmem [shape: f32[512,128], index: 3, kind: output, shape index: {0}]   ;;  %s1067_s4 = inlined_call_operand.vmem [shape: f32[1,128], index: 4, kind: output, shape index: {1}]   ;;  %s1068_s5 = inlined_call_operand.vmem [shape: f32[1,128], index: 5, kind: output, shape index: {2}]  }
   0x1   :  { %s940_s20 = smov 0  }
   0x2 LB: > { %s25_s21 = sadd.s32 1, %s899_s19  ;;  %p760_p0 = scmp.ge.s32.totalorder %s903_s20, 1  ;;  %s903_s20 = sphi %s940_s20, %s16_s20   ;;  %s899_s19 = sphi %s938_s19, %s1070_s19   ;;  %s895_s18 = sphi %s936_s18, %s1069_s18  }
   0x3   : > { %p26_p1 = scmp.ge.s32.totalorder %s25_s21, 4  ;;  %p224_p2 = scmp.lt.s32.totalorder %s903_s20, 5 }
   0x5   : > { %s1072_s21 = smov (%p26_p1, %s25_s21), 0  ;;  %p225_p3 = pnand %p760_p0, %p224_p2 }
   0x6   : > { %v868_v0 = vld [vmem:[%s1064_s1] sm:$0xff] (!%p225_p3)   ;;  %v869_v1 = vld [vmem:[%s1064_s1 + $0x8] sm:$0xff] (!%p225_p3)   ;;  %s761_s26 = sshll.u32 (!%p225_p3), %s895_s18, 4  ;;  %v870_v2 = vld [vmem:[%s1064_s1 + $0x10] sm:$0xff] (!%p225_p3)   ;;  %vm396_vm0 = vcmask (!%p225_p3), 588800   ;;  %vm421_vm1 = vcmask (!%p225_p3), 1043456  }
   0x7   : > { %228 = sbr.rel (%p225_p3) target bundleno = 300 (0x12c), region = 32  ;;  %805 = vmatprep.subr.bf16.mxu0 (!%p225_p3), %v868_v0  ;;  %831 = vmatprep.subr.bf16.mxu1 (!%p225_p3), %v868_v0  ;;  %p269_p4 = scmp.lt.s32.totalorder (!%p225_p3), %s761_s26, 63  ;;  %v871_v3 = vld [vmem:[%s1064_s1 + $0x18] sm:$0xff] (!%p225_p3)   ;;  %v872_v6 = vld [vmem:[%s1064_s1 + $0x20] ss:$0 sps:$4 sm:$0xff] (!%p225_p3)  }
   0x8   : > { %806 = vmatpush3.bf16.msra.mxu0 (!%p225_p3), %v868_v0  ;;  %836 = vmatpush3.bf16.msra.mxu1 (!%p225_p3), %v868_v0  ;;  %v423_v7 = vsel (!%p225_p3), %vm421_vm1, %v872_v6, 0  ;;  %v765_v14 = vld [vmem:[%s1065_s2] ss:$0 sm:$0xff] (!%p225_p3)  ;;  %p787_p5 = scmp.ne.s32.totalorder (!%p225_p3), %s895_s18, 0 }
   0x9   : > { %807 = vmatprep.subr.bf16.mxu0 (!%p225_p3), %v869_v1  ;;  %832 = vmatprep.subr.bf16.mxu1 (!%p225_p3), %v869_v1 }
   0xc   : > { %808 = vmatpush3.bf16.msra.mxu0 (!%p225_p3), %v869_v1  ;;  %837 = vmatpush3.bf16.msra.mxu1 (!%p225_p3), %v869_v1 }
   0xd   : > { %809 = vmatprep.subr.bf16.mxu0 (!%p225_p3), %v870_v2  ;;  %833 = vmatprep.subr.bf16.mxu1 (!%p225_p3), %v870_v2 }
   0xe   : > { %s1074_s26 = smov (!%p269_p4, %s761_s26), 63  ;;  %v905_v47 = vmov (!%p787_p5), 0.0  }
   0xf   : > { %s762_s29 = sshll.u32 %s1074_s26, 2  ;;  %s764_s12 = sshll.u32 %s1074_s26, 3  ;;  %542 = vst [vmem:[%s1067_s4] sm:$0x1] (!%p787_p5), %v905_v47  ;;  %543 = vst [vmem:[%s1068_s5] sm:$0x1] (!%p787_p5), %v905_v47 }
  0x10   : > { %s272_s9 = scalar_lea.vmem %s1063_s0, %s762_s29  ;;  %810 = vmatpush3.bf16.msra.mxu0 %v870_v2  ;;  %838 = vmatpush3.bf16.msra.mxu1 %v870_v2  ;;  %s993_s17 = scalar_lea.vmem %s1066_s3, %s764_s12 }
  0x11   : > { %v873_v4 = vld [vmem:[%s272_s9] sm:$0xff]   ;;  %811 = vmatprep.subr.bf16.mxu0 %v871_v3  ;;  %834 = vmatprep.subr.bf16.mxu1 %v871_v3  ;;  %v875_v8 = vld [vmem:[%s272_s9 + $0x8] sm:$0xff]   ;;  %v877_v10 = vld [vmem:[%s272_s9 + $0x10] sm:$0xff]  }
  0x12   : > { %v874_v5 = vld [vmem:[%s272_s9 + $0x20] sm:$0xff]   ;;  %815 = vmatprep.mubr.msk.bf16.mxu0 %vm396_vm0, %v873_v4  ;;  %v876_v9 = vld [vmem:[%s272_s9 + $0x28] sm:$0xff]   ;;  %v878_v11 = vld [vmem:[%s272_s9 + $0x30] sm:$0xff]  }
  0x13   : > { %823 = vmatprep.mubr.msk.bf16.mxu1 %vm396_vm0, %v874_v5  ;;  %v879_v12 = vld [vmem:[%s272_s9 + $0x18] sm:$0xff]  }
  0x14   : > { %812 = vmatpush3.bf16.msra.mxu0 %v871_v3  ;;  %839 = vmatpush3.bf16.msra.mxu1 %v871_v3  ;;  %v880_v13 = vld [vmem:[%s272_s9 + $0x38] sm:$0xff]  }
  0x15   : > { %841 = vmatprep.subr.msk.bf16.mxu0 %vm421_vm1, %v872_v6  ;;  %842 = vmatprep.subr.msk.bf16.mxu1 %vm421_vm1, %v872_v6 }
  0x18   : > { %814 = vmatpush3.bf16.msra.mxu0 %v423_v7  ;;  %840 = vmatpush3.bf16.msra.mxu1 %v423_v7 }
  0x1b   : > { %816 = vmatmul.mubr.msk.bf16.vlgmr.msra.gmra.mrb[0].mxu0 %vm396_vm0, %v875_v8  ;;  %824 = vmatmul.mubr.msk.bf16.vlgmr.msra.gmra.mrb[0].mxu1 %vm396_vm0, %v876_v9 }
  0x1c   : > { %819 = vmatprep.mubr.msk.bf16.mxu0 %vm396_vm0, %v877_v10  ;;  %827 = vmatprep.mubr.msk.bf16.mxu1 %vm396_vm0, %v878_v11 }
  0x23   : > { %820 = vmatmul.mubr.msk.bf16.gmra.mrb[4].mxu0 %vm396_vm0, %v879_v12  ;;  %828 = vmatmul.mubr.msk.bf16.gmra.mrb[4].mxu1 %vm396_vm0, %v880_v13 }
  0xee   : > { %v817_v15 = vpop.f32.mrb[0].mxu0  ;;  %v825_v16 = vpop.f32.mrb[0].mxu1 }
  0xef   : > { %v468_v17 = vadd.f32 %v817_v15, %v765_v14  ;;  %v995_v18 = vadd.f32 %v825_v16, %v765_v14  ;;  %v459_v19 = vpop.f32.mrb[1].mxu0  ;;  %v491_v20 = vpop.f32.mrb[1].mxu1 }
  0xf0   : > { %v460_v21 = vadd.f32 %v765_v14, %v459_v19  ;;  %v997_v22 = vadd.f32 %v765_v14, %v491_v20  ;;  %v818_v23 = vpop.f32.mrb[2].mxu0  ;;  %v826_v24 = vpop.f32.mrb[2].mxu1 }
  0xf1   : > { %524 = vst [vmem:[%s993_s17 + $0x10] sm:$0xff] %v468_v17  ;;  %532 = vst [vmem:[%s993_s17 + $0x50] sm:$0xff] %v995_v18  ;;  %v471_v25 = vadd.f32 %v818_v23, %v765_v14  ;;  %v1002_v26 = vadd.f32 %v826_v24, %v765_v14  ;;  %v462_v27 = vpop.f32.mrb[3].mxu0  ;;  %v494_v28 = vpop.f32.mrb[3].mxu1 }
  0xf2   : > { %522 = vst [vmem:[%s993_s17] sm:$0xff] %v460_v21  ;;  %530 = vst [vmem:[%s993_s17 + $0x40] sm:$0xff] %v997_v22  ;;  %v463_v29 = vadd.f32 %v765_v14, %v462_v27  ;;  %v495_v30 = vadd.f32 %v765_v14, %v494_v28 }
  0xf3   : > { %525 = vst [vmem:[%s993_s17 + $0x18] sm:$0xff] %v471_v25  ;;  %533 = vst [vmem:[%s993_s17 + $0x58] sm:$0xff] %v1002_v26 }
  0xf4   : > { %523 = vst [vmem:[%s993_s17 + $0x8] sm:$0xff] %v463_v29  ;;  %531 = vst [vmem:[%s993_s17 + $0x48] sm:$0xff] %v495_v30 }
  0xf6   : > { %v821_v31 = vpop.f32.mrb[4].mxu0  ;;  %v829_v32 = vpop.f32.mrb[4].mxu1  ;;  %541 = sbr.rel (%p787_p5) target bundleno = 253 (0xfd), region = 36 }
  0xf7   : > { %v484_v33 = vadd.f32 %v821_v31, %v765_v14  ;;  %v1012_v34 = vadd.f32 %v829_v32, %v765_v14  ;;  %v475_v35 = vpop.f32.mrb[5].mxu0  ;;  %v507_v36 = vpop.f32.mrb[5].mxu1 }
  0xf8   : > { %v476_v37 = vadd.f32 %v765_v14, %v475_v35  ;;  %v508_v38 = vadd.f32 %v765_v14, %v507_v36  ;;  %v822_v39 = vpop.f32.mrb[6].mxu0  ;;  %v830_v40 = vpop.f32.mrb[6].mxu1 }
  0xf9   : > { %528 = vst [vmem:[%s993_s17 + $0x30] sm:$0xff] %v484_v33  ;;  %536 = vst [vmem:[%s993_s17 + $0x70] sm:$0xff] %v1012_v34  ;;  %v487_v41 = vadd.f32 %v822_v39, %v765_v14  ;;  %v519_v42 = vadd.f32 %v830_v40, %v765_v14  ;;  %v478_v43 = vpop.f32.mrb[7].mxu0  ;;  %v510_v44 = vpop.f32.mrb[7].mxu1 }
  0xfa   : > { %526 = vst [vmem:[%s993_s17 + $0x20] sm:$0xff] %v476_v37  ;;  %534 = vst [vmem:[%s993_s17 + $0x60] sm:$0xff] %v508_v38  ;;  %v479_v45 = vadd.f32 %v765_v14, %v478_v43  ;;  %v511_v46 = vadd.f32 %v765_v14, %v510_v44 }
  0xfb   : > { %529 = vst [vmem:[%s993_s17 + $0x38] sm:$0xff] %v487_v41  ;;  %537 = vst [vmem:[%s993_s17 + $0x78] sm:$0xff] %v519_v42 }
  0xfc   : > { %527 = vst [vmem:[%s993_s17 + $0x28] sm:$0xff] %v479_v45  ;;  %535 = vst [vmem:[%s993_s17 + $0x68] sm:$0xff] %v511_v46 }
  0xfd PF: > { %v545_v48 = vadd.f32 %v463_v29, %v460_v21  ;;  %v569_v49 = vmul.f32 %v460_v21, %v460_v21  ;;  %v570_v50 = vmul.f32 %v463_v29, %v463_v29  ;;  %v571_v52 = vmul.f32 %v468_v17, %v468_v17  ;;  %v544_v39 = vld [vmem:[%s1067_s4] sm:$0x1] }
  0xfe   : > { %v572_v54 = vmul.f32 %v471_v25, %v471_v25  ;;  %v573_v57 = vmul.f32 %v476_v37, %v476_v37  ;;  %v574_v60 = vmul.f32 %v479_v45, %v479_v45  ;;  %v575_v63 = vmul.f32 %v484_v33, %v484_v33 }
  0xff   : > { %v546_v51 = vadd.f32 %v545_v48, %v468_v17  ;;  %v585_v55 = vadd.f32 %v570_v50, %v569_v49  ;;  %v576_v2 = vmul.f32 %v487_v41, %v487_v41  ;;  %v577_v5 = vmul.f32 %v997_v22, %v997_v22 }
 0x100   : > { %v578_v8 = vmul.f32 %v495_v30, %v495_v30  ;;  %v579_v11 = vmul.f32 %v995_v18, %v995_v18  ;;  %v580_v14 = vmul.f32 %v1002_v26, %v1002_v26  ;;  %v581_v17 = vmul.f32 %v508_v38, %v508_v38 }
 0x101   : > { %v547_v53 = vadd.f32 %v546_v51, %v471_v25  ;;  %v586_v58 = vadd.f32 %v585_v55, %v571_v52  ;;  %v582_v21 = vmul.f32 %v511_v46, %v511_v46  ;;  %v583_v24 = vmul.f32 %v1012_v34, %v1012_v34 }
 0x102   : > { %v584_v27 = vmul.f32 %v519_v42, %v519_v42 }
 0x103   : > { %v548_v56 = vadd.f32 %v547_v53, %v476_v37  ;;  %v587_v61 = vadd.f32 %v586_v58, %v572_v54 }
 0x105   : > { %v549_v59 = vadd.f32 %v548_v56, %v479_v45  ;;  %v588_v0 = vadd.f32 %v587_v61, %v573_v57 }
 0x107   : > { %v550_v62 = vadd.f32 %v549_v59, %v484_v33  ;;  %v589_v3 = vadd.f32 %v588_v0, %v574_v60 }
 0x109   : > { %v551_v1 = vadd.f32 %v550_v62, %v487_v41  ;;  %v590_v6 = vadd.f32 %v589_v3, %v575_v63 }
 0x10b   : > { %v552_v4 = vadd.f32 %v551_v1, %v997_v22  ;;  %v591_v9 = vadd.f32 %v590_v6, %v576_v2 }
 0x10d   : > { %v553_v7 = vadd.f32 %v552_v4, %v495_v30  ;;  %v592_v12 = vadd.f32 %v591_v9, %v577_v5 }
 0x10f   : > { %v554_v10 = vadd.f32 %v553_v7, %v995_v18  ;;  %v593_v15 = vadd.f32 %v592_v12, %v578_v8 }
 0x111   : > { %v555_v13 = vadd.f32 %v554_v10, %v1002_v26  ;;  %v594_v19 = vadd.f32 %v593_v15, %v579_v11 }
 0x113   : > { %v556_v16 = vadd.f32 %v555_v13, %v508_v38  ;;  %v595_v22 = vadd.f32 %v594_v19, %v580_v14 }
 0x115   : > { %v557_v20 = vadd.f32 %v556_v16, %v511_v46  ;;  %v596_v25 = vadd.f32 %v595_v22, %v581_v17 }
 0x117   : > { %v558_v23 = vadd.f32 %v557_v20, %v1012_v34  ;;  %v597_v28 = vadd.f32 %v596_v25, %v582_v21 }
 0x119   : > { %v559_v18 = vadd.f32 %v558_v23, %v519_v42  ;;  %v598_v30 = vadd.f32 %v597_v28, %v583_v24  ;;  %v568_v42 = vld [vmem:[%s1068_s5] sm:$0x1] }
 0x11b   : > { %v560_v29 = vrot.slane %v559_v18, 4  ;;  %v599_v26 = vadd.f32 %v598_v30, %v584_v27 }
 0x11d   : > { %v561_v31 = vadd.f32 %v560_v29, %v559_v18  ;;  %v600_v33 = vrot.slane %v599_v26, 4 }
 0x11f   : > { %v562_v32 = vrot.slane %v561_v31, 2  ;;  %v601_v36 = vadd.f32 %v600_v33, %v599_v26 }
 0x121   : > { %v563_v35 = vadd.f32 %v562_v32, %v561_v31  ;;  %v602_v38 = vrot.slane %v601_v36, 2 }
 0x123   : > { %v564_v37 = vrot.slane %v563_v35, 1  ;;  %v603_v34 = vadd.f32 %v602_v38, %v601_v36 }
 0x125   : > { %v565_v40 = vadd.f32 %v564_v37, %v563_v35  ;;  %v604_v43 = vrot.slane %v603_v34, 1 }
 0x127   : > { %v566_v41 = vadd.f32 %v565_v40, %v544_v39  ;;  %v605_v44 = vadd.f32 %v604_v43, %v603_v34 }
 0x129   : > { %567 = vst [vmem:[%s1067_s4] sm:$0x1] %v566_v41  ;;  %v606_v45 = vadd.f32 %v605_v44, %v568_v42 }
 0x12b   : > { %607 = vst [vmem:[%s1068_s5] sm:$0x1] %v606_v45 }
 0x12c PF: > { %s16_s20 = sadd.s32 1, %s903_s20   ;;  %s1069_s18 = smov %s899_s19 }
 0x12d   : > { %p13_p6 = scmp.ge.s32.totalorder %s16_s20, 6   ;;  %s1070_s19 = smov %s1072_s21 }
 0x12f   :  { %15 = sbr.rel (!%p13_p6) target bundleno = 2 (0x2), region = 96 }

</bundles_post_ra>
